<compile_context>
chip_gen: v7x
topology: tpu7x:2x2x1
jax: 0.10.0
libtpu: 0.0.40
codegen_flags: <defaults>
</compile_context>

<pallas_src>
import jax
import jax.numpy as jnp
from jax.experimental import pallas as pl
from jax.experimental.pallas import tpu as pltpu

_LANE = 128


def _miou_kernel(x_ref, t_ref, inter_ref, union_ref):
    """Accumulate per-class IoU statistics for one (batch, chunk, tile) step.

    x_ref    : (C, S, 128)  logits tile (native float dtype, upcast to f32)
    t_ref    : (S, 128)     labels tile (int8/int32; padded positions hold -1)
    inter_ref: (C, 128)     per-lane running intersection (resident accumulator)
    union_ref: (C, 128)     per-lane running union        (resident accumulator)
    """
    @pl.when(pl.program_id(2) == 0)
    def _():
        inter_ref[...] = jnp.zeros_like(inter_ref)
        union_ref[...] = jnp.zeros_like(union_ref)

    x = x_ref[...].astype(jnp.float32)              # (C, S, L)
    t = t_ref[...].astype(jnp.int32)                # (S, L)
    C = x.shape[0]

    # Softmax over the class axis (leading dim => pure elementwise across the
    # C spatial slabs; vreg utilization independent of C).
    m = jnp.max(x, axis=0, keepdims=True)           # (1, S, L)
    e = jnp.exp(x - m)                              # (C, S, L)   (EUP)
    denom = jnp.sum(e, axis=0, keepdims=True)       # (1, S, L)
    inv = pl.reciprocal(denom, approx=True)         # EUP vrcp, ~free slot
    p = e * inv                                     # (C, S, L)

    # Per-class IoU partials, unrolled over C.  Padded labels (-1) never match
    # a class.  union uses p + oh - p*oh == where(onehot, 1, p).
    for c in range(C):
        oh = t == c                                  # (S, L) bool
        pc = p[c]                                    # (S, L)
        inter_c = jnp.sum(jnp.where(oh, pc, 0.0), axis=0, keepdims=True)  # (1, L)
        union_c = jnp.sum(jnp.where(oh, 1.0, pc), axis=0, keepdims=True)  # (1, L)
        inter_ref[c:c + 1, :] += inter_c
        union_ref[c:c + 1, :] += union_c


def _vmem_budgets():
    """(tile byte budget, vmem_limit cap) sized for the local TPU generation."""
    try:
        cap = int(pltpu.get_tpu_info().vmem_capacity_bytes)
    except Exception:
        cap = 64 * 1024 * 1024                      # conservative (v7x-sized)
    if cap >= 100 * 1024 * 1024:                    # v5e / v6e: 128 MiB VMEM
        return 36 * 1024 * 1024, 52 * 1024 * 1024
    return 20 * 1024 * 1024, 34 * 1024 * 1024       # v7x: 64 MiB VMEM per TC


def miou_loss(logits, target, weight):
    """Pallas implementation of mIoULoss.forward.

    logits: (N, C, H, W) float (f32 or bf16 -- bf16 halves the HBM stream)
    target: (N, H, W) integer class indices in [0, C)
    weight: (C,) float (the module stores weight*weight internally)
    """
    N, C, H, W = logits.shape
    HW = H * W

    x_itemsize = jnp.dtype(logits.dtype).itemsize
    if C <= 127:
        label_dtype, t_itemsize, row_align = jnp.int8, 1, 32
    else:
        label_dtype, t_itemsize, row_align = jnp.int32, 4, 8

    # VMEM bytes per 128-lane spatial row of a tile: double-buffered streamed
    # inputs plus ~5 tile-sized f32 temporaries inside the kernel (x, e, p, ...).
    per_row = _LANE * (2 * (C * x_itemsize + t_itemsize) + 5 * C * 4)
    tile_budget, vmem_cap = _vmem_budgets()

    rows = -(-HW // _LANE)
    tile_rows = (tile_budget // per_row) // row_align * row_align
    tile_rows = max(row_align, min(4096, tile_rows))
    if rows <= tile_rows:
        tile_rows = -(-rows // row_align) * row_align
    num_tiles = -(-rows // tile_rows)

    # Expose work to both v7x TensorCores even when N == 1 by splitting the
    # spatial tiles into two independent "parallel" chunks (no-op on v5e/v6e).
    n_chunks = 2 if (N == 1 and num_tiles >= 2) else 1
    tiles_per_chunk = -(-num_tiles // n_chunks)
    rows_pad = n_chunks * tiles_per_chunk * tile_rows
    hw_pad = rows_pad * _LANE

    # NOTE: padded logits MUST be exactly zero and padded labels exactly -1;
    # the exact union correction in the epilogue relies on this invariant.
    x = logits.reshape(N, C, HW)                    # native dtype; upcast in-kernel
    t = target.reshape(N, HW).astype(label_dtype)
    pad = hw_pad - HW
    if pad:
        x = jnp.pad(x, ((0, 0), (0, 0), (0, pad)))
        t = jnp.pad(t, ((0, 0), (0, pad)), constant_values=-1)
    x = x.reshape(N, C, rows_pad, _LANE)
    t = t.reshape(N, rows_pad, _LANE)

    vmem_limit = int(min(vmem_cap, tile_rows * per_row + 12 * 1024 * 1024))

    cost = pl.CostEstimate(
        flops=int(8 * N * C * hw_pad),
        transcendentals=int(N * (C + 1) * hw_pad),
        bytes_accessed=int(
            N * C * hw_pad * x_itemsize            # logits stream
            + N * hw_pad * t_itemsize              # labels stream
            + 2 * N * n_chunks * C * _LANE * 4),   # partial-sum outputs
    )

    lhs_map = lambda n, ch, s: (n, 0, ch * tiles_per_chunk + s, 0)
    lbl_map = lambda n, ch, s: (n, ch * tiles_per_chunk + s, 0)
    out_map = lambda n, ch, s: (n, ch, 0, 0)

    inter_part, union_part = pl.pallas_call(
        _miou_kernel,
        out_shape=(
            jax.ShapeDtypeStruct((N, n_chunks, C, _LANE), jnp.float32),
            jax.ShapeDtypeStruct((N, n_chunks, C, _LANE), jnp.float32),
        ),
        grid=(N, n_chunks, tiles_per_chunk),
        in_specs=[
            pl.BlockSpec((None, C, tile_rows, _LANE), lhs_map),
            pl.BlockSpec((None, tile_rows, _LANE), lbl_map),
        ],
        out_specs=(
            pl.BlockSpec((None, None, C, _LANE), out_map),
            pl.BlockSpec((None, None, C, _LANE), out_map),
        ),
        compiler_params=pltpu.CompilerParams(
            dimension_semantics=("parallel", "parallel", "arbitrary"),
            vmem_limit_bytes=vmem_limit,
        ),
        cost_estimate=cost,
    )(x, t)

    # Tiny JAX epilogue: finish lane/chunk reductions, subtract the exact
    # padding contribution (zero logits => softmax == 1/C per class; label -1
    # => zero intersection), apply class weights and -mean().
    inter = inter_part.sum(axis=(1, 3))             # (N, C)
    union = union_part.sum(axis=(1, 3))             # (N, C)
    union = union - (hw_pad - HW) / C
    w2 = (weight * weight).astype(jnp.float32)      # (C,)
    loss = (w2 * inter) / (w2 * union + 1e-8)
    return -jnp.mean(loss)


def miou_loss_ref(logits, target, weight):
    """Pure-JAX reference mirroring the PyTorch module (for verification)."""
    N, C, H, W = logits.shape
    p = jax.nn.softmax(logits.astype(jnp.float32), axis=1)
    oh = jax.nn.one_hot(target, C, axis=1, dtype=jnp.float32)
    inter = (p * oh).reshape(N, C, -1).sum(-1)
    union = (p + oh - p * oh).reshape(N, C, -1).sum(-1)
    w2 = (weight * weight).astype(jnp.float32)
    loss = w2 * inter / (w2 * union + 1e-8)
    return -jnp.mean(loss)


if __name__ == "__main__":
    key = jax.random.PRNGKey(0)
    k_x, k_t = jax.random.split(key)

    # Small but non-trivial shapes; H=W=63 leaves a nonzero padded tail so the
    # epilogue padding correction path is exercised.
    N, C, H, W = 2, 4, 63, 63
    logits = jax.random.normal(k_x, (N, C, H, W), dtype=jnp.float32)
    target = jax.random.randint(k_t, (N, H, W), 0, C, dtype=jnp.int32)
    weight = jnp.array([1.0, 0.5, 2.0, 1.5], dtype=jnp.float32)

    out = miou_loss(logits, target, weight)
    out = jax.block_until_ready(out)

    ref = miou_loss_ref(logits, target, weight)
    # approx reciprocal (EUP vrcp) introduces ~1e-4-level relative error in the
    # per-position probabilities; loosen the tolerance accordingly.
    assert jnp.allclose(out, ref, atol=5e-3, rtol=5e-3), (out, ref)

    print("KERNEL_OK")
</pallas_src>

<mosaic_0001>
module attributes {stable_mosaic.version = 11 : i64} {
  func.func @_miou_kernel(%arg0: i32, %arg1: i32, %arg2: i32, %arg3: memref<1x4x32x128xf32, #tpu.memory_space<vmem>>, %arg4: memref<1x32x128xi8, #tpu.memory_space<vmem>>, %arg5: memref<1x1x4x128xf32, #tpu.memory_space<vmem>>, %arg6: memref<1x1x4x128xf32, #tpu.memory_space<vmem>>) attributes {dimension_semantics = [#tpu.dimension_semantics<parallel>, #tpu.dimension_semantics<parallel>, #tpu.dimension_semantics<arbitrary>], iteration_bounds = array<i64: 2, 1, 1>, scalar_prefetch = 0 : i64, scratch_operands = 0 : i64, tpu.core_type = #tpu.core_type<tc>, window_params = [{transform_indices = @transform_0, window_bounds = array<i64: 1, 4, 32, 128>}, {transform_indices = @transform_1, window_bounds = array<i64: 1, 32, 128>}, {transform_indices = @transform_2, window_bounds = array<i64: 1, 1, 4, 128>}, {transform_indices = @transform_3, window_bounds = array<i64: 1, 1, 4, 128>}]} {
    %c0_i32 = arith.constant 0 : i32
    %0 = arith.cmpi eq, %arg2, %c0_i32 : i32
    %1 = arith.extui %0 : i1 to i32
    %c0_i32_0 = arith.constant 0 : i32
    %2 = arith.cmpi ne, %1, %c0_i32_0 : i32
    scf.if %2 {
      %cst_86 = arith.constant 0.000000e+00 : f32
      %114 = vector.broadcast %cst_86 : f32 to vector<4x128xf32>
      %c0_87 = arith.constant 0 : index
      %c0_88 = arith.constant 0 : index
      %c0_89 = arith.constant 0 : index
      %c0_90 = arith.constant 0 : index
      %115 = vector.load %arg5[%c0_87, %c0_88, %c0_89, %c0_90] : memref<1x1x4x128xf32, #tpu.memory_space<vmem>>, vector<1x1x4x128xf32>
      %116 = vector.shape_cast %115 : vector<1x1x4x128xf32> to vector<4x128xf32>
      %117 = vector.shape_cast %114 : vector<4x128xf32> to vector<1x1x4x128xf32>
      tpu.vector_store %arg5[%c0_87, %c0_88, %c0_89, %c0_90], %117 {strides = array<i32>} : memref<1x1x4x128xf32, #tpu.memory_space<vmem>>, vector<1x1x4x128xf32>,
      %cst_91 = arith.constant 0.000000e+00 : f32
      %118 = vector.broadcast %cst_91 : f32 to vector<4x128xf32>
      %c0_92 = arith.constant 0 : index
      %c0_93 = arith.constant 0 : index
      %c0_94 = arith.constant 0 : index
      %c0_95 = arith.constant 0 : index
      %119 = vector.load %arg6[%c0_92, %c0_93, %c0_94, %c0_95] : memref<1x1x4x128xf32, #tpu.memory_space<vmem>>, vector<1x1x4x128xf32>
      %120 = vector.shape_cast %119 : vector<1x1x4x128xf32> to vector<4x128xf32>
      %121 = vector.shape_cast %118 : vector<4x128xf32> to vector<1x1x4x128xf32>
      tpu.vector_store %arg6[%c0_92, %c0_93, %c0_94, %c0_95], %121 {strides = array<i32>} : memref<1x1x4x128xf32, #tpu.memory_space<vmem>>, vector<1x1x4x128xf32>,
    } else {
    }
    %c0 = arith.constant 0 : index
    %c0_1 = arith.constant 0 : index
    %c0_2 = arith.constant 0 : index
    %c0_3 = arith.constant 0 : index
    %3 = vector.load %arg3[%c0, %c0_1, %c0_2, %c0_3] : memref<1x4x32x128xf32, #tpu.memory_space<vmem>>, vector<1x4x32x128xf32>
    %4 = vector.shape_cast %3 : vector<1x4x32x128xf32> to vector<4x32x128xf32>
    %c0_4 = arith.constant 0 : index
    %c0_5 = arith.constant 0 : index
    %c0_6 = arith.constant 0 : index
    %5 = vector.load %arg4[%c0_4, %c0_5, %c0_6] : memref<1x32x128xi8, #tpu.memory_space<vmem>>, vector<1x32x128xi8>
    %6 = vector.shape_cast %5 : vector<1x32x128xi8> to vector<32x128xi8>
    %7 = arith.extsi %6 : vector<32x128xi8> to vector<32x128xi32>
    %cst = arith.constant dense<0xFF800000> : vector<32x128xf32>
    %8 = vector.multi_reduction <maximumf>, %4, %cst [0] : vector<4x32x128xf32> to vector<32x128xf32>
    %9 = vector.shape_cast %8 : vector<32x128xf32> to vector<1x32x128xf32>
    %10 = vector.broadcast %9 : vector<1x32x128xf32> to vector<4x32x128xf32>
    %11 = arith.subf %4, %10 : vector<4x32x128xf32>
    %12 = math.exp %11 : vector<4x32x128xf32>
    %cst_7 = arith.constant dense<0.000000e+00> : vector<32x128xf32>
    %13 = vector.multi_reduction <add>, %12, %cst_7 [0] : vector<4x32x128xf32> to vector<32x128xf32>
    %14 = vector.shape_cast %13 : vector<32x128xf32> to vector<1x32x128xf32>
    %15 = tpu.reciprocal %14 {approx = true} : vector<1x32x128xf32> -> vector<1x32x128xf32>
    %16 = vector.broadcast %15 : vector<1x32x128xf32> to vector<4x32x128xf32>
    %17 = arith.mulf %12, %16 : vector<4x32x128xf32>
    %c0_i32_8 = arith.constant 0 : i32
    %18 = vector.broadcast %c0_i32_8 : i32 to vector<32x128xi32>
    %19 = arith.cmpi eq, %7, %18 : vector<32x128xi32>
    %20 = vector.extract_strided_slice %17 {offsets = [0, 0, 0], sizes = [1, 32, 128], strides = [1, 1, 1]} : vector<4x32x128xf32> to vector<1x32x128xf32>
    %21 = vector.shape_cast %20 : vector<1x32x128xf32> to vector<32x128xf32>
    %cst_9 = arith.constant 0.000000e+00 : f32
    %22 = vector.broadcast %cst_9 : f32 to vector<32x128xf32>
    %23 = arith.select %19, %21, %22 : vector<32x128xi1>, vector<32x128xf32>
    %cst_10 = arith.constant dense<0.000000e+00> : vector<128xf32>
    %24 = vector.multi_reduction <add>, %23, %cst_10 [0] : vector<32x128xf32> to vector<128xf32>
    %25 = vector.shape_cast %24 : vector<128xf32> to vector<1x128xf32>
    %cst_11 = arith.constant 1.000000e+00 : f32
    %26 = vector.broadcast %cst_11 : f32 to vector<32x128xf32>
    %27 = arith.select %19, %26, %21 : vector<32x128xi1>, vector<32x128xf32>
    %cst_12 = arith.constant dense<0.000000e+00> : vector<128xf32>
    %28 = vector.multi_reduction <add>, %27, %cst_12 [0] : vector<32x128xf32> to vector<128xf32>
    %29 = vector.shape_cast %28 : vector<128xf32> to vector<1x128xf32>
    %c0_13 = arith.constant 0 : index
    %c0_14 = arith.constant 0 : index
    %c0_15 = arith.constant 0 : index
    %c0_16 = arith.constant 0 : index
    %30 = vector.load %arg5[%c0_13, %c0_14, %c0_15, %c0_16] : memref<1x1x4x128xf32, #tpu.memory_space<vmem>>, vector<1x1x1x128xf32>
    %31 = vector.shape_cast %30 : vector<1x1x1x128xf32> to vector<1x128xf32>
    %32 = arith.addf %31, %25 : vector<1x128xf32>
    %c0_17 = arith.constant 0 : index
    %c0_18 = arith.constant 0 : index
    %c0_19 = arith.constant 0 : index
    %c0_20 = arith.constant 0 : index
    %33 = vector.load %arg5[%c0_17, %c0_18, %c0_19, %c0_20] : memref<1x1x4x128xf32, #tpu.memory_space<vmem>>, vector<1x1x1x128xf32>
    %34 = vector.shape_cast %33 : vector<1x1x1x128xf32> to vector<1x128xf32>
    %35 = vector.shape_cast %32 : vector<1x128xf32> to vector<1x1x1x128xf32>
    tpu.vector_store %arg5[%c0_17, %c0_18, %c0_19, %c0_20], %35 {strides = array<i32>} : memref<1x1x4x128xf32, #tpu.memory_space<vmem>>, vector<1x1x1x128xf32>,
    %c0_21 = arith.constant 0 : index
    %c0_22 = arith.constant 0 : index
    %c0_23 = arith.constant 0 : index
    %c0_24 = arith.constant 0 : index
    %36 = vector.load %arg6[%c0_21, %c0_22, %c0_23, %c0_24] : memref<1x1x4x128xf32, #tpu.memory_space<vmem>>, vector<1x1x1x128xf32>
    %37 = vector.shape_cast %36 : vector<1x1x1x128xf32> to vector<1x128xf32>
    %38 = arith.addf %37, %29 : vector<1x128xf32>
    %c0_25 = arith.constant 0 : index
    %c0_26 = arith.constant 0 : index
    %c0_27 = arith.constant 0 : index
    %c0_28 = arith.constant 0 : index
    %39 = vector.load %arg6[%c0_25, %c0_26, %c0_27, %c0_28] : memref<1x1x4x128xf32, #tpu.memory_space<vmem>>, vector<1x1x1x128xf32>
    %40 = vector.shape_cast %39 : vector<1x1x1x128xf32> to vector<1x128xf32>
    %41 = vector.shape_cast %38 : vector<1x128xf32> to vector<1x1x1x128xf32>
    tpu.vector_store %arg6[%c0_25, %c0_26, %c0_27, %c0_28], %41 {strides = array<i32>} : memref<1x1x4x128xf32, #tpu.memory_space<vmem>>, vector<1x1x1x128xf32>,
    %c1_i32 = arith.constant 1 : i32
    %42 = vector.broadcast %c1_i32 : i32 to vector<32x128xi32>
    %43 = arith.cmpi eq, %7, %42 : vector<32x128xi32>
    %44 = vector.extract_strided_slice %17 {offsets = [1, 0, 0], sizes = [1, 32, 128], strides = [1, 1, 1]} : vector<4x32x128xf32> to vector<1x32x128xf32>
    %45 = vector.shape_cast %44 : vector<1x32x128xf32> to vector<32x128xf32>
    %cst_29 = arith.constant 0.000000e+00 : f32
    %46 = vector.broadcast %cst_29 : f32 to vector<32x128xf32>
    %47 = arith.select %43, %45, %46 : vector<32x128xi1>, vector<32x128xf32>
    %cst_30 = arith.constant dense<0.000000e+00> : vector<128xf32>
    %48 = vector.multi_reduction <add>, %47, %cst_30 [0] : vector<32x128xf32> to vector<128xf32>
    %49 = vector.shape_cast %48 : vector<128xf32> to vector<1x128xf32>
    %cst_31 = arith.constant 1.000000e+00 : f32
    %50 = vector.broadcast %cst_31 : f32 to vector<32x128xf32>
    %51 = arith.select %43, %50, %45 : vector<32x128xi1>, vector<32x128xf32>
    %cst_32 = arith.constant dense<0.000000e+00> : vector<128xf32>
    %52 = vector.multi_reduction <add>, %51, %cst_32 [0] : vector<32x128xf32> to vector<128xf32>
    %53 = vector.shape_cast %52 : vector<128xf32> to vector<1x128xf32>
    %c0_33 = arith.constant 0 : index
    %c0_34 = arith.constant 0 : index
    %c1 = arith.constant 1 : index
    %c0_35 = arith.constant 0 : index
    %54 = vector.load %arg5[%c0_33, %c0_34, %c1, %c0_35] : memref<1x1x4x128xf32, #tpu.memory_space<vmem>>, vector<1x1x1x128xf32>
    %55 = vector.shape_cast %54 : vector<1x1x1x128xf32> to vector<1x128xf32>
    %56 = arith.addf %55, %49 : vector<1x128xf32>
    %c0_36 = arith.constant 0 : index
    %c0_37 = arith.constant 0 : index
    %c1_38 = arith.constant 1 : index
    %c0_39 = arith.constant 0 : index
    %57 = vector.load %arg5[%c0_36, %c0_37, %c1_38, %c0_39] : memref<1x1x4x128xf32, #tpu.memory_space<vmem>>, vector<1x1x1x128xf32>
    %58 = vector.shape_cast %57 : vector<1x1x1x128xf32> to vector<1x128xf32>
    %59 = vector.shape_cast %56 : vector<1x128xf32> to vector<1x1x1x128xf32>
    tpu.vector_store %arg5[%c0_36, %c0_37, %c1_38, %c0_39], %59 {strides = array<i32>} : memref<1x1x4x128xf32, #tpu.memory_space<vmem>>, vector<1x1x1x128xf32>,
    %c0_40 = arith.constant 0 : index
    %c0_41 = arith.constant 0 : index
    %c1_42 = arith.constant 1 : index
    %c0_43 = arith.constant 0 : index
    %60 = vector.load %arg6[%c0_40, %c0_41, %c1_42, %c0_43] : memref<1x1x4x128xf32, #tpu.memory_space<vmem>>, vector<1x1x1x128xf32>
    %61 = vector.shape_cast %60 : vector<1x1x1x128xf32> to vector<1x128xf32>
    %62 = arith.addf %61, %53 : vector<1x128xf32>
    %c0_44 = arith.constant 0 : index
    %c0_45 = arith.constant 0 : index
    %c1_46 = arith.constant 1 : index
    %c0_47 = arith.constant 0 : index
    %63 = vector.load %arg6[%c0_44, %c0_45, %c1_46, %c0_47] : memref<1x1x4x128xf32, #tpu.memory_space<vmem>>, vector<1x1x1x128xf32>
    %64 = vector.shape_cast %63 : vector<1x1x1x128xf32> to vector<1x128xf32>
    %65 = vector.shape_cast %62 : vector<1x128xf32> to vector<1x1x1x128xf32>
    tpu.vector_store %arg6[%c0_44, %c0_45, %c1_46, %c0_47], %65 {strides = array<i32>} : memref<1x1x4x128xf32, #tpu.memory_space<vmem>>, vector<1x1x1x128xf32>,
    %c2_i32 = arith.constant 2 : i32
    %66 = vector.broadcast %c2_i32 : i32 to vector<32x128xi32>
    %67 = arith.cmpi eq, %7, %66 : vector<32x128xi32>
    %68 = vector.extract_strided_slice %17 {offsets = [2, 0, 0], sizes = [1, 32, 128], strides = [1, 1, 1]} : vector<4x32x128xf32> to vector<1x32x128xf32>
    %69 = vector.shape_cast %68 : vector<1x32x128xf32> to vector<32x128xf32>
    %cst_48 = arith.constant 0.000000e+00 : f32
    %70 = vector.broadcast %cst_48 : f32 to vector<32x128xf32>
    %71 = arith.select %67, %69, %70 : vector<32x128xi1>, vector<32x128xf32>
    %cst_49 = arith.constant dense<0.000000e+00> : vector<128xf32>
    %72 = vector.multi_reduction <add>, %71, %cst_49 [0] : vector<32x128xf32> to vector<128xf32>
    %73 = vector.shape_cast %72 : vector<128xf32> to vector<1x128xf32>
    %cst_50 = arith.constant 1.000000e+00 : f32
    %74 = vector.broadcast %cst_50 : f32 to vector<32x128xf32>
    %75 = arith.select %67, %74, %69 : vector<32x128xi1>, vector<32x128xf32>
    %cst_51 = arith.constant dense<0.000000e+00> : vector<128xf32>
    %76 = vector.multi_reduction <add>, %75, %cst_51 [0] : vector<32x128xf32> to vector<128xf32>
    %77 = vector.shape_cast %76 : vector<128xf32> to vector<1x128xf32>
    %c0_52 = arith.constant 0 : index
    %c0_53 = arith.constant 0 : index
    %c2 = arith.constant 2 : index
    %c0_54 = arith.constant 0 : index
    %78 = vector.load %arg5[%c0_52, %c0_53, %c2, %c0_54] : memref<1x1x4x128xf32, #tpu.memory_space<vmem>>, vector<1x1x1x128xf32>
    %79 = vector.shape_cast %78 : vector<1x1x1x128xf32> to vector<1x128xf32>
    %80 = arith.addf %79, %73 : vector<1x128xf32>
    %c0_55 = arith.constant 0 : index
    %c0_56 = arith.constant 0 : index
    %c2_57 = arith.constant 2 : index
    %c0_58 = arith.constant 0 : index
    %81 = vector.load %arg5[%c0_55, %c0_56, %c2_57, %c0_58] : memref<1x1x4x128xf32, #tpu.memory_space<vmem>>, vector<1x1x1x128xf32>
    %82 = vector.shape_cast %81 : vector<1x1x1x128xf32> to vector<1x128xf32>
    %83 = vector.shape_cast %80 : vector<1x128xf32> to vector<1x1x1x128xf32>
    tpu.vector_store %arg5[%c0_55, %c0_56, %c2_57, %c0_58], %83 {strides = array<i32>} : memref<1x1x4x128xf32, #tpu.memory_space<vmem>>, vector<1x1x1x128xf32>,
    %c0_59 = arith.constant 0 : index
    %c0_60 = arith.constant 0 : index
    %c2_61 = arith.constant 2 : index
    %c0_62 = arith.constant 0 : index
    %84 = vector.load %arg6[%c0_59, %c0_60, %c2_61, %c0_62] : memref<1x1x4x128xf32, #tpu.memory_space<vmem>>, vector<1x1x1x128xf32>
    %85 = vector.shape_cast %84 : vector<1x1x1x128xf32> to vector<1x128xf32>
    %86 = arith.addf %85, %77 : vector<1x128xf32>
    %c0_63 = arith.constant 0 : index
    %c0_64 = arith.constant 0 : index
    %c2_65 = arith.constant 2 : index
    %c0_66 = arith.constant 0 : index
    %87 = vector.load %arg6[%c0_63, %c0_64, %c2_65, %c0_66] : memref<1x1x4x128xf32, #tpu.memory_space<vmem>>, vector<1x1x1x128xf32>
    %88 = vector.shape_cast %87 : vector<1x1x1x128xf32> to vector<1x128xf32>
    %89 = vector.shape_cast %86 : vector<1x128xf32> to vector<1x1x1x128xf32>
    tpu.vector_store %arg6[%c0_63, %c0_64, %c2_65, %c0_66], %89 {strides = array<i32>} : memref<1x1x4x128xf32, #tpu.memory_space<vmem>>, vector<1x1x1x128xf32>,
    %c3_i32 = arith.constant 3 : i32
    %90 = vector.broadcast %c3_i32 : i32 to vector<32x128xi32>
    %91 = arith.cmpi eq, %7, %90 : vector<32x128xi32>
    %92 = vector.extract_strided_slice %17 {offsets = [3, 0, 0], sizes = [1, 32, 128], strides = [1, 1, 1]} : vector<4x32x128xf32> to vector<1x32x128xf32>
    %93 = vector.shape_cast %92 : vector<1x32x128xf32> to vector<32x128xf32>
    %cst_67 = arith.constant 0.000000e+00 : f32
    %94 = vector.broadcast %cst_67 : f32 to vector<32x128xf32>
    %95 = arith.select %91, %93, %94 : vector<32x128xi1>, vector<32x128xf32>
    %cst_68 = arith.constant dense<0.000000e+00> : vector<128xf32>
    %96 = vector.multi_reduction <add>, %95, %cst_68 [0] : vector<32x128xf32> to vector<128xf32>
    %97 = vector.shape_cast %96 : vector<128xf32> to vector<1x128xf32>
    %cst_69 = arith.constant 1.000000e+00 : f32
    %98 = vector.broadcast %cst_69 : f32 to vector<32x128xf32>
    %99 = arith.select %91, %98, %93 : vector<32x128xi1>, vector<32x128xf32>
    %cst_70 = arith.constant dense<0.000000e+00> : vector<128xf32>
    %100 = vector.multi_reduction <add>, %99, %cst_70 [0] : vector<32x128xf32> to vector<128xf32>
    %101 = vector.shape_cast %100 : vector<128xf32> to vector<1x128xf32>
    %c0_71 = arith.constant 0 : index
    %c0_72 = arith.constant 0 : index
    %c3 = arith.constant 3 : index
    %c0_73 = arith.constant 0 : index
    %102 = vector.load %arg5[%c0_71, %c0_72, %c3, %c0_73] : memref<1x1x4x128xf32, #tpu.memory_space<vmem>>, vector<1x1x1x128xf32>
    %103 = vector.shape_cast %102 : vector<1x1x1x128xf32> to vector<1x128xf32>
    %104 = arith.addf %103, %97 : vector<1x128xf32>
    %c0_74 = arith.constant 0 : index
    %c0_75 = arith.constant 0 : index
    %c3_76 = arith.constant 3 : index
    %c0_77 = arith.constant 0 : index
    %105 = vector.load %arg5[%c0_74, %c0_75, %c3_76, %c0_77] : memref<1x1x4x128xf32, #tpu.memory_space<vmem>>, vector<1x1x1x128xf32>
    %106 = vector.shape_cast %105 : vector<1x1x1x128xf32> to vector<1x128xf32>
    %107 = vector.shape_cast %104 : vector<1x128xf32> to vector<1x1x1x128xf32>
    tpu.vector_store %arg5[%c0_74, %c0_75, %c3_76, %c0_77], %107 {strides = array<i32>} : memref<1x1x4x128xf32, #tpu.memory_space<vmem>>, vector<1x1x1x128xf32>,
    %c0_78 = arith.constant 0 : index
    %c0_79 = arith.constant 0 : index
    %c3_80 = arith.constant 3 : index
    %c0_81 = arith.constant 0 : index
    %108 = vector.load %arg6[%c0_78, %c0_79, %c3_80, %c0_81] : memref<1x1x4x128xf32, #tpu.memory_space<vmem>>, vector<1x1x1x128xf32>
    %109 = vector.shape_cast %108 : vector<1x1x1x128xf32> to vector<1x128xf32>
    %110 = arith.addf %109, %101 : vector<1x128xf32>
    %c0_82 = arith.constant 0 : index
    %c0_83 = arith.constant 0 : index
    %c3_84 = arith.constant 3 : index
    %c0_85 = arith.constant 0 : index
    %111 = vector.load %arg6[%c0_82, %c0_83, %c3_84, %c0_85] : memref<1x1x4x128xf32, #tpu.memory_space<vmem>>, vector<1x1x1x128xf32>
    %112 = vector.shape_cast %111 : vector<1x1x1x128xf32> to vector<1x128xf32>
    %113 = vector.shape_cast %110 : vector<1x128xf32> to vector<1x1x1x128xf32>
    tpu.vector_store %arg6[%c0_82, %c0_83, %c3_84, %c0_85], %113 {strides = array<i32>} : memref<1x1x4x128xf32, #tpu.memory_space<vmem>>, vector<1x1x1x128xf32>,
    return
  }
  func.func @transform_0(%arg0: i32, %arg1: i32, %arg2: i32) -> (i32, i32, i32, i32) {
    %c1_i32 = arith.constant 1 : i32
    %0 = arith.muli %arg1, %c1_i32 : i32
    %1 = arith.addi %0, %arg2 : i32
    %c0_i32 = arith.constant 0 : i32
    %c0_i32_0 = arith.constant 0 : i32
    %c0_i32_1 = arith.constant 0 : i32
    return %arg0, %c0_i32, %1, %c0_i32_0 : i32, i32, i32, i32
  }
  func.func @transform_1(%arg0: i32, %arg1: i32, %arg2: i32) -> (i32, i32, i32) {
    %c1_i32 = arith.constant 1 : i32
    %0 = arith.muli %arg1, %c1_i32 : i32
    %1 = arith.addi %0, %arg2 : i32
    %c0_i32 = arith.constant 0 : i32
    %c0_i32_0 = arith.constant 0 : i32
    return %arg0, %1, %c0_i32 : i32, i32, i32
  }
  func.func @transform_2(%arg0: i32, %arg1: i32, %arg2: i32) -> (i32, i32, i32, i32) {
    %c0_i32 = arith.constant 0 : i32
    %c0_i32_0 = arith.constant 0 : i32
    %c0_i32_1 = arith.constant 0 : i32
    return %arg0, %arg1, %c0_i32, %c0_i32_0 : i32, i32, i32, i32
  }
  func.func @transform_3(%arg0: i32, %arg1: i32, %arg2: i32) -> (i32, i32, i32, i32) {
    %c0_i32 = arith.constant 0 : i32
    %c0_i32_0 = arith.constant 0 : i32
    %c0_i32_1 = arith.constant 0 : i32
    return %arg0, %arg1, %c0_i32, %c0_i32_0 : i32, i32, i32, i32
  }
}

</mosaic_0001>

<bundles_post_ra>
// kernel: tpu_custom_call.1
= control target key start
LH: loop header
LB: loop body
LE: loop exit
PB: predicated region body
PF: predicated region fallthrough
CT: control target
= control target key end

     0   :  { %9 = vsyncpa [#allocation3], 0  ;;  %s1488_s0 = inlined_call_operand.hbm [shape: f32[2,4,32,128], index: 0, kind: input, shape index: {}]   ;;  %s1489_s1 = inlined_call_operand.hbm [shape: s8[2,32,128], index: 1, kind: input, shape index: {}]   ;;  %s1490_s2 = inlined_call_operand.hbm [shape: f32[2,1,4,128], index: 2, kind: output, shape index: {0}]   ;;  %s1491_s3 = inlined_call_operand.hbm [shape: f32[2,1,4,128], index: 3, kind: output, shape index: {1}]  }
   0x1   :  { %11 = vsyncpa [#allocation3 + $0x1], 0 }
   0x2   :  { %12 = vsyncpa [#allocation6], 0 }
   0x3   :  { %14 = vsyncpa [#allocation6 + $0x1], 0 }
   0x4   :  { %15 = vsyncpa [#allocation4], 0 }
   0x5   :  { %17 = vsyncpa [#allocation4 + $0x1], 0 }
   0x6   :  { %18 = vsyncpa [#allocation9], 0 }
   0x7   :  { %20 = vsyncpa [#allocation9 + $0x1], 0  ;;  %s1060_s12 = smov 0   ;;  %s1062_s13 = smov 0  }
   0x8   :  { %s1064_s14 = smov 0   ;;  %s1066_s15 = smov 0  }
   0x9   :  { %s1068_s16 = smov 0   ;;  %s1070_s17 = smov 0  }
   0xa LB: > { %s717_s18 = sadd.s32 4294967295, %s1031_s17   ;;  %s718_s19 = sadd.s32 4294967294, %s1031_s17   ;;  %s1031_s17 = sphi %s1070_s17, %s26_s17   ;;  %s1027_s16 = sphi %s1068_s16, %s1510_s16   ;;  %s1023_s15 = sphi %s1066_s15, %s1509_s15   ;;  %s1019_s14 = sphi %s1064_s14, %s1508_s14   ;;  %s1015_s13 = sphi %s1062_s13, %s1507_s13   ;;  %s1011_s12 = sphi %s1060_s12, %s1506_s12  }
   0xb   : > { %s45_s20 = sadd.s32 1, %s1027_s16  ;;  %s56_s21 = sadd.s32 1, %s1019_s14 }
   0xc   : > { %p47_p0 = scmp.ge.s32.totalorder %s45_s20, 2  ;;  %p63_p1 = scmp.ne.s32.totalorder %s1019_s14, %s1015_s13 }
   0xd   : > { %p64_p2 = scmp.eq.s32.totalorder %s1031_s17, 0  ;;  %p69_p3 = scmp.ne.s32.totalorder %s1015_s13, %s1011_s12 }
   0xe   : > { %s1512_s20 = smov (%p47_p0, %s45_s20), 0  ;;  %p70_p5 = scmp.eq.s32.totalorder %s717_s18, 0 }
   0xf   : > { %p1101_p4 = por %p64_p2, %p63_p1  ;;  %s51_s23 = ssub.s32 %s1027_s16, %s1512_s20 }
  0x10   : > { %p125_p6 = scmp.eq.s32.totalorder %s717_s18, 1  ;;  %p54_p7 = scmp.eq.s32.totalorder %s51_s23, 0 }
  0x11   : > { %p1107_p8 = por %p70_p5, %p69_p3  ;;  %p131_p10 = scmp.eq.s32.totalorder %s718_s19, 1 }
  0x12   : > { %p1111_p9 = por %p125_p6, %p63_p1  ;;  %p760_p13 = scmp.lt.s32.totalorder %s1031_s17, 2 }
  0x13   : > { %s1495_s24 = scalar_select %p1107_p8, 1, 0 }
  0x14   : > { %s1496_s25 = scalar_select %p1111_p9, 1, 0 }
  0x15   : > { %s1116_s26 = scalar_select %p54_p7, %s1019_s14, %s56_s21  }
  0x16   : > { %p1118_p11 = por %p131_p10, %p69_p3  ;;  %s1125_s28 = sand.u32 1, %s1019_s14  }
  0x17   : > { %s721_s29 = sshll.u32 %s1125_s28, 7  ;;  %s737_s30 = sshll.u32 %s1027_s16, 11 }
  0x18   : > { %s1497_s27 = scalar_select %p1118_p11, 1, 0 }
  0x19   : > { %s1132_s6 = scalar_lea.hbm %s1488_s0, %s737_s30  ;;  %s183_s7 = scalar_lea.vmem [#allocation2], %s721_s29 }
  0x1a   : > { %s193_s8 = sshll.u32 %s183_s7, 4  ;;  %p1138_p0 = pnand %p760_p13, %p1101_p4  ;;  %s1134_s8 = int_to_ptr.vmem [resolvable:$true] %s193_s8 }
  0x1b   : > { %s180_s10 = scalar_lea.sflag [#allocation3], %s1125_s28  ;;  %s853_s11 = scalar_lea.hbm %s1132_s6, 2048 }
  0x1c   : > { %p854_p2 = scmp.ne.s32.totalorder %s1132_s6, %s853_s11  ;;  %p855_p3 = pneg %p1138_p0 }
  0x1d   : > { %s858_s21 = scalar_lea.hbm %s1488_s0, 4096  ;;  %p859_p4 = scmp.lt.u32.totalorder %s1132_s6, %s1488_s0 }
  0x1e   : > { %p856_p5 = pnand %p855_p3, %p854_p2  ;;  %p860_p7 = scmp.lt.u32.totalorder %s858_s21, %s853_s11 }
  0x1f   : > { %p862_p13 = scmp.lt.u32.totalorder %s853_s11, %s1132_s6 }
  0x20   : > { %p857_p6 = pneg %p856_p5  ;;  %p861_p10 = por %p860_p7, %p859_p4 }
  0x22   : > { %p863_p12 = por %p862_p13, %p861_p10 }
  0x24   : > { %p864_p1 = pnand %p863_p12, %p857_p6 }
  0x26   : > { %867 = shalt.err (!%p864_p1)
}
  0x27   : > { %s868_s29 = scalar_lea.vmem %s1134_s8, 2048  ;;  %s1033_s30 = smov [#allocation2]  }
  0x28   : > { %p869_p2 = scmp.ne.s32.totalorder %s1134_s8, %s868_s29  ;;  %s873_s4 = sshll.u32 %s1033_s30, 4  ;;  %s874_s4 = int_to_ptr.vmem [resolvable:$false] %s873_s4 }
  0x29   : > { %s875_s5 = scalar_lea.vmem %s874_s4, 4096  ;;  %p876_p9 = scmp.lt.s32.totalorder %s1134_s8, %s874_s4 }
  0x2a   : > { %p871_p5 = pnand %p869_p2, %p855_p3  ;;  %p877_p4 = scmp.lt.s32.totalorder %s875_s5, %s868_s29 }
  0x2c   : > { %p872_p11 = pneg %p871_p5  ;;  %p878_p7 = por %p877_p4, %p876_p9 }
  0x2e   : > { %p879_p10 = pnand %p878_p7, %p872_p11 }
  0x30   : > { %882 = shalt.err (!%p879_p10)
}
  0x31   : > { %s1034_s7 = smov 128   ;;  %s1035_s11 = smov 8  }
  0x32   : > { %749 = dma.hbm_to_vmem [thread:$0]  (!%p1138_p0), %s1132_s6, 2048, %s1134_s8, %s180_s10, %s1034_s7, %s1034_s7, %s1035_s11  }
  0x33   : > { %p221_p12 = scmp.lt.s32.totalorder %s1031_s17, 3  ;;  %s724_s18 = sshll.u32 %s1125_s28, 3 }
  0x34   : > { %s725_s19 = sshll.u32 %s1027_s16, 7  ;;  %p1499_p9 = scmp.ge.s32.totalorder %s1031_s17, 1 }
  0x35   : > { %s1183_s29 = scalar_lea.hbm %s1489_s1, %s725_s19  ;;  %s207_s30 = scalar_lea.vmem [#allocation5], %s724_s18 }
  0x36   : > { %p1176_p11 = pnand %p1499_p9, %p221_p12  ;;  %s216_s4 = sshll.u32 %s207_s30, 4  ;;  %s217_s4 = int_to_ptr.vmem [resolvable:$true] %s216_s4 }
  0x37   : > { %s204_s6 = scalar_lea.sflag [#allocation6], %s1125_s28  ;;  %s883_s8 = scalar_lea.hbm %s1183_s29, 128 }
  0x38   : > { %s1500_s21 = scalar_select %p1176_p11, 1, 0 }
  0x39   : > { %p884_p1 = scmp.ne.s32.totalorder %s1183_s29, %s883_s8  ;;  %s888_s7 = scalar_lea.hbm %s1489_s1, 256 }
  0x3a   : > { %p889_p2 = scmp.lt.u32.totalorder %s1183_s29, %s1489_s1  ;;  %p890_p5 = scmp.lt.u32.totalorder %s888_s7, %s883_s8 }
  0x3b   : > { %p886_p6 = pnand %p884_p1, %p855_p3  ;;  %p892_p7 = scmp.lt.u32.totalorder %s883_s8, %s1183_s29 }
  0x3c   : > { %p891_p4 = por %p890_p5, %p889_p2 }
  0x3d   : > { %p887_p13 = pneg %p886_p6 }
  0x3e   : > { %p893_p10 = por %p892_p7, %p891_p4 }
  0x40   : > { %p894_p12 = pnand %p893_p10, %p887_p13 }
  0x42   : > { %897 = shalt.err (!%p894_p12)
}
  0x43   : > { %s898_s28 = scalar_lea.vmem %s217_s4, 128  ;;  %s1036_s18 = smov [#allocation5]  }
  0x44   : > { %p899_p9 = scmp.ne.s32.totalorder %s217_s4, %s898_s28  ;;  %s903_s22 = sshll.u32 %s1036_s18, 4  ;;  %s904_s22 = int_to_ptr.vmem [resolvable:$false] %s903_s22 }
  0x45   : > { %s905_s23 = scalar_lea.vmem %s904_s22, 256  ;;  %p906_p8 = scmp.lt.s32.totalorder %s217_s4, %s904_s22 }
  0x46   : > { %p901_p1 = pnand %p899_p9, %p855_p3  ;;  %p907_p11 = scmp.lt.s32.totalorder %s905_s23, %s898_s28 }
  0x48   : > { %p902_p6 = pneg %p901_p1  ;;  %p908_p2 = por %p907_p11, %p906_p8 }
  0x4a   : > { %p909_p5 = pnand %p908_p2, %p902_p6 }
  0x4c   : > { %912 = shalt.err (!%p909_p5)
}
  0x4d   : > { %752 = dma.hbm_to_vmem [thread:$0]  (!%p1138_p0), %s1183_s29, 128, %s217_s4, %s204_s6  }
  0x4e   : > { %p1501_p13 = scmp.ne.s32.totalorder %s1500_s21, 0 }
  0x4f   : > { %s1208_s30 = sand.u32 (!%p1501_p13), 1, %s1015_s13   ;;  %p1502_p8 = scmp.ne.s32.totalorder (!%p1501_p13), %s1495_s24, 0 }
  0x50   : > { %225 = sbr.rel (%p1501_p13) target bundleno = 218 (0xda), region = 28  ;;  %s727_s8 = sshll.u32 (!%p1501_p13), %s1208_s30, 7 }
  0x51   : > { %s228_s10 = scalar_lea.sflag (!%p1501_p13), [#allocation3], %s1208_s30  ;;  %s1212_s5 = scalar_lea.vmem (!%p1501_p13), [#allocation2], %s727_s8 }
  0x57   : > { %994 = dma.done.wait (%p1502_p8), %s228_s10, 2048  }
  0x58   : > { %996 = vsyncadd (%p1502_p8), %s228_s10, 4294965248  ;;  %s728_s9 = sshll.u32 %s1208_s30, 3  ;;  %s237_s21 = scalar_lea.sflag [#allocation6], %s1208_s30 }
  0x59   : > { %s1220_s29 = scalar_lea.vmem [#allocation5], %s728_s9 }
  0x5a   : > { %998 = dma.done.wait (%p1502_p8), %s237_s21, 128  }
  0x5b   : > { %1000 = vsyncadd (%p1502_p8), %s237_s21, 4294967168  ;;  %s729_s4 = sshll.u32 %s1208_s30, 2  ;;  %v1037_v0 = vmov 0.0   ;;  %v282_v1 = vld [vmem:[%s1212_s5] sm:$0xff]  ;;  %v283_v2 = vld [vmem:[%s1212_s5 + $0x8] sm:$0xff]  ;;  %s733_s7 = sshll.u32 %s1023_s15, 6 }
  0x5c   : > { %s1227_s6 = scalar_lea.vmem [#allocation7], %s729_s4  ;;  %s1230_s24 = scalar_lea.vmem [#allocation8], %s729_s4  ;;  %v284_v3 = vld [vmem:[%s1212_s5 + $0x10] sm:$0xff]  ;;  %v285_v4 = vld [vmem:[%s1212_s5 + $0x18] sm:$0xff]  ;;  %v286_v5 = vld [vmem:[%s1212_s5 + $0x20] sm:$0xff] }
  0x5d   : > { %280 = vst [vmem:[%s1227_s6] sm:$0xf] %v1037_v0  ;;  %281 = vst [vmem:[%s1230_s24] sm:$0xf] %v1037_v0  ;;  %v287_v6 = vld [vmem:[%s1212_s5 + $0x28] sm:$0xff]  ;;  %v288_v7 = vld [vmem:[%s1212_s5 + $0x30] sm:$0xff]  ;;  %v303_v10 = vmax.f32 %v282_v1, %v286_v5  ;;  %s559_s11 = sshll.u32 %s1227_s6, 4  ;;  %s1402_s18 = scalar_lea.hbm %s1490_s2, %s733_s7  ;;  %s1404_s11 = int_to_ptr.vmem [resolvable:$true] %s559_s11 }
  0x5e   : > { %v289_v8 = vld [vmem:[%s1212_s5 + $0x38] sm:$0xff]  ;;  %v290_v9 = vld [vmem:[%s1212_s5 + $0x40] sm:$0xff]  ;;  %v306_v11 = vmax.f32 %v283_v2, %v287_v6  ;;  %v291_v12 = vld [vmem:[%s1212_s5 + $0x48] sm:$0xff]  ;;  %v309_v15 = vmax.f32 %v284_v3, %v288_v7  ;;  %s573_s22 = sshll.u32 %s1230_s24, 4  ;;  %s540_s23 = scalar_lea.sflag [#allocation4], %s1208_s30  ;;  %s1440_s22 = int_to_ptr.vmem [resolvable:$true] %s573_s22 }
  0x5f   : > { %v292_v13 = vld [vmem:[%s1212_s5 + $0x50] sm:$0xff]  ;;  %v293_v14 = vld [vmem:[%s1212_s5 + $0x58] sm:$0xff]  ;;  %v312_v16 = vmax.f32 %v285_v4, %v289_v8  ;;  %v294_v17 = vld [vmem:[%s1212_s5 + $0x60] sm:$0xff]  ;;  %v304_v20 = vmax.f32 %v303_v10, %v290_v9  ;;  %s913_s8 = scalar_lea.vmem %s1404_s11, 64  ;;  %p1503_p3 = scmp.ne.s32.totalorder %s1496_s25, 0 }
  0x60   : > { %v295_v18 = vld [vmem:[%s1212_s5 + $0x68] sm:$0xff]  ;;  %v296_v19 = vld [vmem:[%s1212_s5 + $0x70] sm:$0xff]  ;;  %v307_v21 = vmax.f32 %v306_v11, %v291_v12  ;;  %v297_v22 = vld [vmem:[%s1212_s5 + $0x78] sm:$0xff]  ;;  %v310_v23 = vmax.f32 %v309_v15, %v292_v13  ;;  %p914_p0 = scmp.ne.s32.totalorder %s1404_s11, %s913_s8  ;;  %s1038_s10 = smov [#allocation7]  }
  0x61   : > { %v313_v24 = vmax.f32 %v312_v16, %v293_v14  ;;  %v305_v25 = vmax.f32 %v304_v20, %v294_v17  ;;  %s917_s5 = sshll.u32 %s1038_s10, 4  ;;  %s918_s5 = int_to_ptr.vmem [resolvable:$false] %s917_s5 }
  0x62   : > { %v308_v26 = vmax.f32 %v307_v21, %v295_v18  ;;  %v311_v27 = vmax.f32 %v310_v23, %v296_v19  ;;  %p915_p11 = pnand %p914_p0, %p1503_p3  ;;  %s919_s9 = scalar_lea.vmem %s918_s5, 128 }
  0x63   : > { %v314_v28 = vmax.f32 %v313_v24, %v297_v22  ;;  %v315_v29 = vsub.f32 %v282_v1, %v305_v25  ;;  %v319_v33 = vsub.f32 %v286_v5, %v305_v25  ;;  %v323_v41 = vsub.f32 %v290_v9, %v305_v25  ;;  %v298_v24 = vld [vmem:[%s1220_s29] sm:$0xff]  ;;  %p920_p7 = scmp.lt.s32.totalorder %s1404_s11, %s918_s5  ;;  %p921_p10 = scmp.lt.s32.totalorder %s919_s9, %s913_s8 }
  0x64   : > { %v316_v30 = vsub.f32 %v283_v2, %v308_v26  ;;  %v317_v31 = vsub.f32 %v284_v3, %v311_v27  ;;  %v320_v34 = vsub.f32 %v287_v6, %v308_v26  ;;  %v321_v35 = vsub.f32 %v288_v7, %v311_v27  ;;  %p916_p4 = pneg %p915_p11 }
  0x65   : > { %v318_v32 = vsub.f32 %v285_v4, %v314_v28  ;;  %v331_v36 = vmul.f32 1.442695, %v315_v29  ;;  %v322_v39 = vsub.f32 %v289_v8, %v314_v28  ;;  %v339_v42 = vmul.f32 1.442695, %v319_v33  ;;  %p922_p12 = por %p921_p10, %p920_p7 }
  0x66   : > { %v333_v37 = vmul.f32 1.442695, %v316_v30  ;;  %v335_v38 = vmul.f32 1.442695, %v317_v31  ;;  %v324_v43 = vsub.f32 %v291_v12, %v308_v26  ;;  %v341_v44 = vmul.f32 1.442695, %v320_v34 }
  0x67   : > { %v337_v40 = vmul.f32 1.442695, %v318_v32  ;;  %813 = vpow2.f32 %v331_v36  ;;  %v325_v45 = vsub.f32 %v292_v13, %v311_v27  ;;  %v343_v46 = vmul.f32 1.442695, %v321_v35  ;;  %p923_p9 = pnand %p922_p12, %p916_p4 }
  0x68   : > { %815 = vpow2.f32 %v333_v37  ;;  %v326_v47 = vsub.f32 %v293_v14, %v314_v28  ;;  %v345_v48 = vmul.f32 1.442695, %v322_v39  ;;  %v327_v49 = vsub.f32 %v294_v17, %v305_v25 }
  0x69   : > { %817 = vpow2.f32 %v335_v38  ;;  %v347_v50 = vmul.f32 1.442695, %v323_v41  ;;  %v328_v51 = vsub.f32 %v295_v18, %v308_v26  ;;  %v349_v52 = vmul.f32 1.442695, %v324_v43 }
  0x6a   : > { %819 = vpow2.f32 %v337_v40  ;;  %v329_v53 = vsub.f32 %v296_v19, %v311_v27  ;;  %v351_v54 = vmul.f32 1.442695, %v325_v45  ;;  %v330_v55 = vsub.f32 %v297_v22, %v314_v28 }
  0x6b   : > { %821 = vpow2.f32 %v339_v42  ;;  %v353_v56 = vmul.f32 1.442695, %v326_v47  ;;  %v355_v57 = vmul.f32 1.442695, %v327_v49  ;;  %v357_v58 = vmul.f32 1.442695, %v328_v51 }
  0x6c   : > { %823 = vpow2.f32 %v341_v44  ;;  %v359_v60 = vmul.f32 1.442695, %v329_v53  ;;  %v361_v62 = vmul.f32 1.442695, %v330_v55  ;;  %v1268_v26 = vunpack.c.0.s8 %v298_v24 }
  0x6d   : > { %825 = vpow2.f32 %v343_v46  ;;  %v1270_v27 = vunpack.c.1.s8 %v298_v24  ;;  %v1272_v28 = vunpack.c.2.s8 %v298_v24  ;;  %v1274_v29 = vunpack.c.3.s8 %v298_v24 }
  0x6e   : > { %827 = vpow2.f32 %v345_v48  ;;  %vm395_vm0 = vcmp.eq.s32.totalorder %v1268_v26, 0  ;;  %vm431_vm4 = vcmp.eq.s32.totalorder %v1268_v26, 1  ;;  %vm467_vm8 = vcmp.eq.s32.totalorder %v1268_v26, 2 }
  0x6f   : > { %829 = vpow2.f32 %v347_v50  ;;  %vm396_vm1 = vcmp.eq.s32.totalorder %v1270_v27, 0  ;;  %vm397_vm2 = vcmp.eq.s32.totalorder %v1272_v28, 0  ;;  %vm398_vm3 = vcmp.eq.s32.totalorder %v1274_v29, 0 }
  0x70   : > { %831 = vpow2.f32 %v349_v52  ;;  %vm432_vm5 = vcmp.eq.s32.totalorder %v1270_v27, 1  ;;  %vm433_vm6 = vcmp.eq.s32.totalorder %v1272_v28, 1  ;;  %vm434_vm7 = vcmp.eq.s32.totalorder %v1274_v29, 1 }
  0x71   : > { %v814_v59 = vpop.eup %813  ;;  %833 = vpow2.f32 %v351_v54  ;;  %vm468_vm9 = vcmp.eq.s32.totalorder %v1270_v27, 2  ;;  %vm469_vm10 = vcmp.eq.s32.totalorder %v1272_v28, 2  ;;  %vm470_vm11 = vcmp.eq.s32.totalorder %v1274_v29, 2 }
  0x72   : > { %v816_v61 = vpop.eup %815  ;;  %835 = vpow2.f32 %v353_v56  ;;  %vm503_vm12 = vcmp.eq.s32.totalorder %v1268_v26, 3  ;;  %vm504_vm13 = vcmp.eq.s32.totalorder %v1270_v27, 3  ;;  %vm505_vm14 = vcmp.eq.s32.totalorder %v1272_v28, 3 }
  0x73   : > { %v1249_v63 = vpop.eup %817  ;;  %837 = vpow2.f32 %v355_v57  ;;  %vm506_vm15 = vcmp.eq.s32.totalorder %v1274_v29, 3 }
  0x74   : > { %v1251_v0 = vpop.eup %819  ;;  %839 = vpow2.f32 %v357_v58 }
  0x75   : > { %v822_v1 = vpop.eup %821  ;;  %841 = vpow2.f32 %v359_v60 }
  0x76   : > { %v824_v2 = vpop.eup %823  ;;  %843 = vpow2.f32 %v361_v62  ;;  %v363_v3 = vadd.f32 %v822_v1, %v814_v59 }
  0x77   : > { %v826_v4 = vpop.eup %825  ;;  %v366_v5 = vadd.f32 %v824_v2, %v816_v61 }
  0x78   : > { %v828_v6 = vpop.eup %827  ;;  %v369_v7 = vadd.f32 %v826_v4, %v1249_v63 }
  0x79   : > { %v830_v8 = vpop.eup %829  ;;  %v372_v9 = vadd.f32 %v828_v6, %v1251_v0 }
  0x7a   : > { %v832_v10 = vpop.eup %831  ;;  %v364_v11 = vadd.f32 %v830_v8, %v363_v3 }
  0x7b   : > { %v1255_v12 = vpop.eup %833  ;;  %v367_v13 = vadd.f32 %v832_v10, %v366_v5 }
  0x7c   : > { %v1257_v14 = vpop.eup %835  ;;  %v370_v15 = vadd.f32 %v1255_v12, %v369_v7 }
  0x7d   : > { %v838_v16 = vpop.eup %837  ;;  %v373_v17 = vadd.f32 %v1257_v14, %v372_v9 }
  0x7e   : > { %v840_v18 = vpop.eup %839  ;;  %v365_v19 = vadd.f32 %v838_v16, %v364_v11 }
  0x7f   : > { %v1261_v20 = vpop.eup %841  ;;  %v368_v21 = vadd.f32 %v840_v18, %v367_v13 }
  0x80   : > { %v1263_v22 = vpop.eup %843  ;;  %v371_v23 = vadd.f32 %v1261_v20, %v370_v15  ;;  %845 = vrcp.f32 %v365_v19 }
  0x81   : > { %v374_v25 = vadd.f32 %v1263_v22, %v373_v17  ;;  %847 = vrcp.f32 %v368_v21 }
  0x82   : > { %849 = vrcp.f32 %v371_v23 }
  0x83   : > { %851 = vrcp.f32 %v374_v25 }
  0x8a   : > { %v846_v30 = vpop.eup %845 }
  0x8b   : > { %v848_v31 = vpop.eup %847  ;;  %v379_v32 = vmul.f32 %v846_v30, %v814_v59  ;;  %v383_v33 = vmul.f32 %v846_v30, %v822_v1  ;;  %v387_v34 = vmul.f32 %v846_v30, %v830_v8  ;;  %v1288_v35 = vmul.f32 %v846_v30, %v838_v16 }
  0x8c   : > { %v1290_v36 = vpop.eup %849  ;;  %v380_v37 = vmul.f32 %v848_v31, %v816_v61  ;;  %v384_v38 = vmul.f32 %v848_v31, %v824_v2  ;;  %v388_v39 = vmul.f32 %v848_v31, %v832_v10  ;;  %v1292_v40 = vmul.f32 %v848_v31, %v840_v18 }
  0x8d   : > { %v1294_v41 = vpop.eup %851  ;;  %v381_v42 = vmul.f32 %v1290_v36, %v1249_v63  ;;  %v399_v43 = vsel %vm395_vm0, %v379_v32, 0.0  ;;  %v412_v44 = vsel %vm395_vm0, 1.0, %v379_v32  ;;  %v385_v45 = vmul.f32 %v1290_v36, %v826_v4 }
  0x8e   : > { %v382_v46 = vmul.f32 %v1294_v41, %v1251_v0  ;;  %v400_v47 = vsel %vm396_vm1, %v380_v37, 0.0  ;;  %v413_v48 = vsel %vm396_vm1, 1.0, %v380_v37  ;;  %v386_v49 = vmul.f32 %v1294_v41, %v828_v6 }
  0x8f   : > { %v401_v50 = vsel %vm397_vm2, %v381_v42, 0.0  ;;  %v403_v51 = vadd.f32 %v400_v47, %v399_v43  ;;  %v414_v52 = vsel %vm397_vm2, 1.0, %v381_v42  ;;  %v416_v53 = vadd.f32 %v413_v48, %v412_v44 }
  0x90   : > { %v402_v54 = vsel %vm398_vm3, %v382_v46, 0.0  ;;  %v415_v55 = vsel %vm398_vm3, 1.0, %v382_v46  ;;  %v435_v56 = vsel %vm431_vm4, %v383_v33, 0.0  ;;  %v436_v57 = vsel %vm432_vm5, %v384_v38, 0.0 }
  0x91   : > { %v404_v58 = vadd.f32 %v403_v51, %v401_v50  ;;  %v417_v59 = vadd.f32 %v416_v53, %v414_v52  ;;  %v437_v60 = vsel %vm433_vm6, %v385_v45, 0.0  ;;  %v438_v61 = vsel %vm434_vm7, %v386_v49, 0.0 }
  0x92   : > { %v439_v62 = vadd.f32 %v436_v57, %v435_v56  ;;  %v448_v63 = vsel %vm431_vm4, 1.0, %v383_v33  ;;  %v449_v0 = vsel %vm432_vm5, 1.0, %v384_v38  ;;  %v450_v1 = vsel %vm433_vm6, 1.0, %v385_v45 }
  0x93   : > { %v405_v2 = vadd.f32 %v404_v58, %v402_v54  ;;  %v418_v3 = vadd.f32 %v417_v59, %v415_v55  ;;  %v451_v4 = vsel %vm434_vm7, 1.0, %v386_v49  ;;  %v452_v5 = vadd.f32 %v449_v0, %v448_v63  ;;  %v428_v55 = vld [vmem:[%s1230_s24] sm:$0x1] }
  0x94   : > { %v440_v6 = vadd.f32 %v439_v62, %v437_v60  ;;  %v389_v7 = vmul.f32 %v1290_v36, %v1255_v12  ;;  %v390_v8 = vmul.f32 %v1294_v41, %v1257_v14  ;;  %v471_v9 = vsel %vm467_vm8, %v387_v34, 0.0 }
  0x95   : > { %v406_v10 = vrot.slane %v405_v2, 4  ;;  %v419_v11 = vrot.slane %v418_v3, 4  ;;  %v453_v13 = vadd.f32 %v452_v5, %v450_v1  ;;  %v472_v15 = vsel %vm468_vm9, %v388_v39, 0.0 }
  0x96   : > { %v441_v16 = vadd.f32 %v440_v6, %v438_v61  ;;  %v473_v17 = vsel %vm469_vm10, %v389_v7, 0.0  ;;  %v474_v12 = vsel %vm470_vm11, %v390_v8, 0.0  ;;  %v475_v18 = vadd.f32 %v472_v15, %v471_v9 }
  0x97   : > { %v407_v14 = vadd.f32 %v406_v10, %v405_v2  ;;  %v420_v19 = vadd.f32 %v419_v11, %v418_v3  ;;  %v454_v21 = vadd.f32 %v453_v13, %v451_v4  ;;  %v484_v23 = vsel %vm467_vm8, 1.0, %v387_v34  ;;  %v461_v4 = vld [vmem:[%s1227_s6 + $0x1] sm:$0x1] }
  0x98   : > { %v442_v24 = vrot.slane %v441_v16, 4  ;;  %v476_v25 = vadd.f32 %v475_v18, %v473_v17  ;;  %v485_v30 = vsel %vm468_vm9, 1.0, %v388_v39  ;;  %v486_v31 = vsel %vm469_vm10, 1.0, %v389_v7 }
  0x99   : > { %v408_v32 = vrot.slane %v407_v14, 2  ;;  %v421_v33 = vrot.slane %v420_v19, 2  ;;  %v455_v37 = vrot.slane %v454_v21, 4  ;;  %v487_v38 = vsel %vm470_vm11, 1.0, %v390_v8  ;;  %v464_v8 = vld [vmem:[%s1230_s24 + $0x1] sm:$0x1] }
  0x9a   : > { %v443_v42 = vadd.f32 %v442_v24, %v441_v16  ;;  %v477_v43 = vadd.f32 %v476_v25, %v474_v12  ;;  %v488_v44 = vadd.f32 %v485_v30, %v484_v23  ;;  %v393_v34 = vmul.f32 %v1290_v36, %v1261_v20  ;;  %v425_v36 = vld [vmem:[%s1227_s6] sm:$0x1] }
  0x9b   : > { %v409_v45 = vadd.f32 %v408_v32, %v407_v14  ;;  %v422_v46 = vadd.f32 %v421_v33, %v420_v19  ;;  %v456_v39 = vadd.f32 %v455_v37, %v454_v21  ;;  %v394_v47 = vmul.f32 %v1294_v41, %v1263_v22  ;;  %v497_v14 = vld [vmem:[%s1227_s6 + $0x2] sm:$0x1] }
  0x9c   : > { %v444_v48 = vrot.slane %v443_v42, 2  ;;  %v478_v49 = vrot.slane %v477_v43, 4  ;;  %v489_v50 = vadd.f32 %v488_v44, %v486_v31  ;;  %v507_v51 = vsel %vm503_vm12, %v1288_v35, 0.0  ;;  %v500_v31 = vld [vmem:[%s1230_s24 + $0x2] sm:$0x1] }
  0x9d   : > { %v410_v52 = vrot.slane %v409_v45, 1  ;;  %v423_v53 = vrot.slane %v422_v46, 1  ;;  %v457_v54 = vrot.slane %v456_v39, 2  ;;  %v508_v20 = vsel %vm504_vm13, %v1292_v40, 0.0 }
  0x9e   : > { %v445_v56 = vadd.f32 %v444_v48, %v443_v42  ;;  %v479_v57 = vadd.f32 %v478_v49, %v477_v43  ;;  %v490_v22 = vadd.f32 %v489_v50, %v487_v38  ;;  %v509_v41 = vsel %vm505_vm14, %v393_v34, 0.0  ;;  %v536_v49 = vld [vmem:[%s1230_s24 + $0x3] sm:$0x1] }
  0x9f   : > { %v411_v58 = vadd.f32 %v410_v52, %v409_v45  ;;  %v424_v59 = vadd.f32 %v423_v53, %v422_v46  ;;  %v458_v60 = vadd.f32 %v457_v54, %v456_v39  ;;  %v510_v61 = vsel %vm506_vm15, %v394_v47, 0.0 }
  0xa0   : > { %v446_v62 = vrot.slane %v445_v56, 1  ;;  %v480_v63 = vrot.slane %v479_v57, 2  ;;  %v491_v0 = vrot.slane %v490_v22, 4  ;;  %v511_v1 = vadd.f32 %v508_v20, %v507_v51 }
  0xa1   : > { %v426_v2 = vadd.f32 %v425_v36, %v411_v58  ;;  %v429_v3 = vadd.f32 %v428_v55, %v424_v59  ;;  %v459_v5 = vrot.slane %v458_v60, 1  ;;  %v520_v6 = vsel %vm503_vm12, 1.0, %v1288_v35 }
  0xa2   : > { %v447_v7 = vadd.f32 %v446_v62, %v445_v56  ;;  %v481_v9 = vadd.f32 %v480_v63, %v479_v57  ;;  %v492_v10 = vadd.f32 %v491_v0, %v490_v22  ;;  %v512_v11 = vadd.f32 %v511_v1, %v509_v41 }
  0xa3   : > { %427 = vst [vmem:[%s1227_s6] sm:$0x1] %v426_v2  ;;  %430 = vst [vmem:[%s1230_s24] sm:$0x1] %v429_v3  ;;  %v460_v13 = vadd.f32 %v459_v5, %v458_v60  ;;  %v521_v15 = vsel %vm504_vm13, 1.0, %v1292_v40  ;;  %v522_v16 = vsel %vm505_vm14, 1.0, %v393_v34  ;;  %v523_v27 = vsel %vm506_vm15, 1.0, %v394_v47 }
  0xa4   : > { %v462_v26 = vadd.f32 %v461_v4, %v447_v7  ;;  %v482_v35 = vrot.slane %v481_v9, 1  ;;  %v493_v17 = vrot.slane %v492_v10, 2  ;;  %v513_v12 = vadd.f32 %v512_v11, %v510_v61  ;;  %v533_v34 = vld [vmem:[%s1227_s6 + $0x3] sm:$0x1] }
  0xa5   : > { %v465_v18 = vadd.f32 %v464_v8, %v460_v13  ;;  %v524_v19 = vadd.f32 %v521_v15, %v520_v6 }
  0xa6   : > { %463 = vst [vmem:[%s1227_s6 + $0x1] sm:$0x1] %v462_v26  ;;  %v483_v21 = vadd.f32 %v482_v35, %v481_v9  ;;  %v494_v23 = vadd.f32 %v493_v17, %v492_v10  ;;  %v514_v24 = vrot.slane %v513_v12, 4 }
  0xa7   : > { %466 = vst [vmem:[%s1230_s24 + $0x1] sm:$0x1] %v465_v18  ;;  %v525_v28 = vadd.f32 %v524_v19, %v522_v16 }
  0xa8   : > { %v498_v40 = vadd.f32 %v497_v14, %v483_v21  ;;  %v495_v25 = vrot.slane %v494_v23, 1  ;;  %v515_v30 = vadd.f32 %v514_v24, %v513_v12 }
  0xa9   : > { %v526_v32 = vadd.f32 %v525_v28, %v523_v27 }
  0xaa   : > { %499 = vst [vmem:[%s1227_s6 + $0x2] sm:$0x1] %v498_v40  ;;  %v496_v33 = vadd.f32 %v495_v25, %v494_v23  ;;  %v516_v37 = vrot.slane %v515_v30, 2 }
  0xab   : > { %v527_v38 = vrot.slane %v526_v32, 4 }
  0xac   : > { %v501_v42 = vadd.f32 %v500_v31, %v496_v33  ;;  %v517_v29 = vadd.f32 %v516_v37, %v515_v30 }
  0xad   : > { %v528_v43 = vadd.f32 %v527_v38, %v526_v32 }
  0xae   : > { %502 = vst [vmem:[%s1230_s24 + $0x2] sm:$0x1] %v501_v42  ;;  %v518_v44 = vrot.slane %v517_v29, 1 }
  0xaf   : > { %v529_v45 = vrot.slane %v528_v43, 2 }
  0xb0   : > { %v519_v46 = vadd.f32 %v518_v44, %v517_v29 }
  0xb1   : > { %v530_v39 = vadd.f32 %v529_v45, %v528_v43 }
  0xb2   : > { %v534_v47 = vadd.f32 %v533_v34, %v519_v46 }
  0xb3   : > { %v531_v48 = vrot.slane %v530_v39, 1 }
  0xb4   : > { %535 = vst [vmem:[%s1227_s6 + $0x3] sm:$0x1] %v534_v47 }
  0xb5   : > { %v532_v50 = vadd.f32 %v531_v48, %v530_v39 }
  0xb6   : > { %926 = shalt.err (!%p923_p9)
}
  0xb7   : > { %s927_s21 = scalar_lea.hbm %s1402_s18, 64  ;;  %s931_s6 = scalar_lea.hbm %s1490_s2, 128 }
  0xb8   : > { %p928_p1 = scmp.ne.s32.totalorder %s1402_s18, %s927_s21  ;;  %p932_p5 = scmp.lt.u32.totalorder %s1402_s18, %s1490_s2 }
  0xb9   : > { %p933_p13 = scmp.lt.u32.totalorder %s931_s6, %s927_s21  ;;  %p935_p0 = scmp.lt.u32.totalorder %s927_s21, %s1402_s18 }
  0xba   : > { %p929_p6 = pnand %p928_p1, %p1503_p3 }
  0xbb   : > { %p934_p8 = por %p933_p13, %p932_p5 }
  0xbc   : > { %p930_p2 = pneg %p929_p6 }
  0xbd   : > { %p936_p11 = por %p935_p0, %p934_p8 }
  0xbf   : > { %p937_p4 = pnand %p936_p11, %p930_p2 }
  0xc1   : > { %940 = shalt.err (!%p937_p4)
}
  0xc2   : > { %742 = dma.vmem_to_hbm [thread:$0]  (%p1503_p3), %s1404_s11, 64, %s1402_s18, %s540_s23   ;;  %v537_v51 = vadd.f32 %v536_v49, %v532_v50 }
  0xc3   : > { %s1436_s5 = scalar_lea.hbm %s1491_s3, %s733_s7  ;;  %s545_s9 = scalar_lea.sflag [#allocation9], %s1208_s30 }
  0xc4   : > { %538 = vst [vmem:[%s1230_s24 + $0x3] sm:$0x1] %v537_v51  ;;  %s941_s21 = scalar_lea.vmem %s1440_s22, 64  ;;  %s1039_s11 = smov [#allocation8]  }
  0xc5   : > { %p942_p7 = scmp.ne.s32.totalorder %s1440_s22, %s941_s21  ;;  %s945_s15 = sshll.u32 %s1039_s11, 4  ;;  %s946_s15 = int_to_ptr.vmem [resolvable:$false] %s945_s15 }
  0xc6   : > { %s947_s18 = scalar_lea.vmem %s946_s15, 128  ;;  %p948_p9 = scmp.lt.s32.totalorder %s1440_s22, %s946_s15 }
  0xc7   : > { %p943_p10 = pnand %p942_p7, %p1503_p3  ;;  %p949_p1 = scmp.lt.s32.totalorder %s947_s18, %s941_s21 }
  0xc9   : > { %p944_p12 = pneg %p943_p10  ;;  %p950_p6 = por %p949_p1, %p948_p9 }
  0xcb   : > { %p951_p2 = pnand %p950_p6, %p944_p12 }
  0xcd   : > { %954 = shalt.err (!%p951_p2)
}
  0xce   : > { %s955_s30 = scalar_lea.hbm %s1436_s5, 64  ;;  %s959_s23 = scalar_lea.hbm %s1491_s3, 128 }
  0xcf   : > { %p956_p5 = scmp.ne.s32.totalorder %s1436_s5, %s955_s30  ;;  %p960_p0 = scmp.lt.u32.totalorder %s1436_s5, %s1491_s3 }
  0xd0   : > { %p961_p11 = scmp.lt.u32.totalorder %s959_s23, %s955_s30  ;;  %p963_p7 = scmp.lt.u32.totalorder %s955_s30, %s1436_s5 }
  0xd1   : > { %p957_p13 = pnand %p956_p5, %p1503_p3 }
  0xd2   : > { %p962_p4 = por %p961_p11, %p960_p0 }
  0xd3   : > { %p958_p8 = pneg %p957_p13 }
  0xd4   : > { %p964_p10 = por %p963_p7, %p962_p4 }
  0xd6   : > { %p965_p12 = pnand %p964_p10, %p958_p8 }
  0xd8   : > { %968 = shalt.err (!%p965_p12)
}
  0xd9   : > { %743 = dma.vmem_to_hbm [thread:$0]  (%p1503_p3), %s1440_s22, 64, %s1436_s5, %s545_s9  }
  0xda PF: > { %s585_s6 = sand.u32 1, %s1011_s12   ;;  %p1504_p9 = scmp.ne.s32.totalorder %s1497_s27, 0 }
  0xdb   : > { %p1505_p1 = scmp.ge.s32.totalorder %s1031_s17, 2  ;;  %s586_s19 = scalar_lea.sflag [#allocation4], %s585_s6 }
  0xdd   : > { %p754_p6 = pnand %p1505_p1, %p1504_p9 }
  0xdf   : > { %1002 = dma.done.wait (!%p754_p6), %s586_s19, 64  }
  0xe0   : > { %1004 = vsyncadd (!%p754_p6), %s586_s19, 4294967232  ;;  %s595_s28 = scalar_lea.sflag [#allocation9], %s585_s6 }
  0xe1   : > { %1006 = dma.done.wait (!%p754_p6), %s595_s28, 64  }
  0xe2   : > { %1008 = vsyncadd (!%p754_p6), %s595_s28, 4294967232  ;;  %s26_s17 = sadd.s32 1, %s1031_s17   ;;  %s1506_s12 = smov %s1015_s13 }
  0xe3   : > { %p23_p2 = scmp.ge.s32.totalorder %s26_s17, 4   ;;  %s1507_s13 = smov %s1019_s14 }
  0xe4   : > { %s1508_s14 = smov %s1116_s26  ;;  %s1509_s15 = smov %s1027_s16 }
  0xe5   : > { %s1510_s16 = smov %s1512_s20  ;;  %25 = sbr.rel (!%p23_p2) target bundleno = 10 (0xa), region = 107 }
  0xec   :  { %600 = vsyncpa [#allocation3], 1 }
  0xed   :  { %602 = vsyncpa [#allocation3 + $0x1], 1 }
  0xee   :  { %603 = vsyncpa [#allocation6], 1 }
  0xef   :  { %605 = vsyncpa [#allocation6 + $0x1], 1 }
  0xf0   :  { %606 = vsyncpa [#allocation4], 1 }
  0xf1   :  { %608 = vsyncpa [#allocation4 + $0x1], 1 }
  0xf2   :  { %609 = vsyncpa [#allocation9], 1 }
  0xf3   :  { %611 = vsyncpa [#allocation9 + $0x1], 1 }

</bundles_post_ra>
